<compile_context>
chip_gen: v7x
topology: tpu7x:2x2x1
jax: 0.10.0
libtpu: 0.0.40
codegen_flags: <defaults>
</compile_context>

<pallas_src>
import functools

import jax
import jax.numpy as jnp
import numpy as np
from jax.experimental import pallas as pl
from jax.experimental.pallas import tpu as pltpu


def _soft_argmax_kernel(x_ref, g_ref, coords_ref, ent_ref, *, beta, d, batched):
    # batched=False: x_ref (TR, N), g_ref (N, d+1), outs (TR, d)/(TR, 1)
    # batched=True : x_ref (1, TC, N), g_ref (1, N, d+1), outs (1, TC, d)/(1, TC, 1)
    if batched:
        x = x_ref[0].astype(jnp.float32)          # (TC, N)
        g_aug = g_ref[0]                          # (N, d+1) f32
    else:
        x = x_ref[...].astype(jnp.float32)        # (TR, N)
        g_aug = g_ref[...]                        # (N, d+1) f32

    z = beta * x
    m = jnp.max(z, axis=-1, keepdims=True)        # (rows, 1)   XLU reduce
    zm = z - m                                    # (rows, N)
    e = jnp.exp(zm)                               # (rows, N)   only full-size EUP pass

    # MXU does the lane-sum reductions (MXU is otherwise idle at D=2):
    #   e      @ [g | 1] -> [unnormalized coords | s]
    #   (e*zm) @ [g | 1] -> last column = sum(e*zm)
    hi = jax.lax.Precision.HIGHEST
    cs = jnp.dot(e, g_aug, preferred_element_type=jnp.float32, precision=hi)
    coords_un = cs[:, :d]                         # (rows, d)
    s = cs[:, d:]                                 # (rows, 1)
    ezm = jnp.dot(e * zm, g_aug, preferred_element_type=jnp.float32,
                  precision=hi)[:, d:]            # (rows, 1)

    # 1/s on the tiny (rows, 1) tensor: EUP approx reciprocal + one Newton step.
    r = pl.reciprocal(s, approx=True)
    inv_s = r * (2.0 - s * r)

    coords = coords_un * inv_s                    # (rows, d)
    ent = jnp.log(s) - inv_s * ezm                # (rows, 1)

    if batched:
        coords_ref[0] = coords.astype(coords_ref.dtype)
        ent_ref[0] = ent.astype(ent_ref.dtype)
    else:
        coords_ref[...] = coords.astype(coords_ref.dtype)
        ent_ref[...] = ent.astype(ent_ref.dtype)


def _vmem_limit_bytes():
    """Explicit scoped-VMEM limit, sized from the actual chip generation."""
    try:
        cap = int(pltpu.get_tpu_info().vmem_capacity_bytes)
    except Exception:
        cap = 64 * 1024 * 1024            # conservative fallback (v7x per-core VMEM)
    return int(min((cap * 3) // 4, 96 * 1024 * 1024))


def _grids_vmem_bytes(N):
    # (N, D+1) f32 block: lanes pad to 128, sublanes to 8; count both pipeline buffers.
    n_pad = ((N + 7) // 8) * 8
    return 2 * n_pad * 128 * 4


def _pick_tile(rows, N, x_itemsize, vmem_limit, reserved):
    """Largest multiple-of-8 row tile whose working set fits the VMEM budget."""
    # Per tile row: double-buffered x input block + f32 temporaries
    # (cast copy, zm, e, e*zm) materialized inside the kernel.
    per_row = int(N) * (2 * int(x_itemsize) + 4 * 4)
    budget = max(int(vmem_limit) - int(reserved) - (1 << 20), per_row * 8)
    tr = max(8, (budget // per_row) // 8 * 8)
    tr = min(tr, 2048)                    # DMA efficiency plateaus well before this
    if rows <= tr:
        return int(rows)                  # single full-extent block (always legal)
    return int(tr)


def _cost(rows, N, D, x_itemsize):
    return pl.CostEstimate(
        flops=int(4 * rows * N * (D + 1) + 6 * rows * N),
        transcendentals=int(rows * N),
        bytes_accessed=int(rows * N * x_itemsize + N * (D + 1) * 4
                           + rows * (D + 1) * 4),
    )


def soft_argmax(x, grids, *, beta, row_tile=None):
    """Soft-argmax over flattened heatmaps.

    x:     (B, C, *spatial), f32 or bf16 (bf16 halves HBM reads; math is f32).
    grids: (N, D) shared across the batch (fast path), or (B, N, D) per-batch
           (exact PyTorch module signature), with N = prod(spatial).
    Returns (coords (B, C, D) f32, entropy (B, C, 1) f32).
    """
    B, C = x.shape[0], x.shape[1]
    N = int(np.prod(x.shape[2:]))
    D = grids.shape[-1]
    g_batched = grids.ndim == 3
    if g_batched:
        assert grids.shape == (B, N, D), (grids.shape, (B, N, D))
    else:
        assert grids.shape == (N, D), (grids.shape, (N, D))

    # Ones-augmented grid so one MXU matmul yields [unnorm coords | sum(e)].
    g32 = grids.astype(jnp.float32)
    g_aug = jnp.concatenate(
        [g32, jnp.ones(g32.shape[:-1] + (1,), jnp.float32)], axis=-1)

    itemsize = jnp.dtype(x.dtype).itemsize
    vmem_limit = _vmem_limit_bytes()
    g_vmem = _grids_vmem_bytes(N)
    kernel = functools.partial(_soft_argmax_kernel, beta=float(beta), d=D,
                               batched=g_batched)
    cost = _cost(B * C, N, D, itemsize)

    if not g_batched:
        # Fast path: fold batch and channel into one row axis, tile rows large.
        rows = B * C
        x_rows = x.reshape(rows, N)
        tr = int(row_tile) if row_tile is not None else _pick_tile(
            rows, N, itemsize, vmem_limit, g_vmem)
        coords, ent = pl.pallas_call(
            kernel,
            out_shape=(jax.ShapeDtypeStruct((rows, D), jnp.float32),
                       jax.ShapeDtypeStruct((rows, 1), jnp.float32)),
            grid_spec=pltpu.PrefetchScalarGridSpec(
                num_scalar_prefetch=0,
                grid=(pl.cdiv(rows, tr),),
                in_specs=[
                    pl.BlockSpec((tr, N), lambda i: (i, 0)),
                    # Constant block index -> fetched once, resident in VMEM.
                    pl.BlockSpec((N, D + 1), lambda i: (0, 0)),
                ],
                out_specs=[
                    pl.BlockSpec((tr, D), lambda i: (i, 0)),
                    pl.BlockSpec((tr, 1), lambda i: (i, 0)),
                ],
            ),
            compiler_params=pltpu.CompilerParams(
                dimension_semantics=("parallel",),
                vmem_limit_bytes=vmem_limit,
            ),
            cost_estimate=cost,
        )(x_rows, g_aug)
        return coords.reshape(B, C, D), ent.reshape(B, C, 1)

    # Per-batch grids (exact module signature): tile channels within each batch.
    x_flat = x.reshape(B, C, N)
    tc = int(row_tile) if row_tile is not None else _pick_tile(
        C, N, itemsize, vmem_limit, g_vmem)
    coords, ent = pl.pallas_call(
        kernel,
        out_shape=(jax.ShapeDtypeStruct((B, C, D), jnp.float32),
                   jax.ShapeDtypeStruct((B, C, 1), jnp.float32)),
        grid_spec=pltpu.PrefetchScalarGridSpec(
            num_scalar_prefetch=0,
            grid=(B, pl.cdiv(C, tc)),
            in_specs=[
                pl.BlockSpec((1, tc, N), lambda b, c: (b, c, 0)),
                # Re-fetched only when the batch index changes.
                pl.BlockSpec((1, N, D + 1), lambda b, c: (b, 0, 0)),
            ],
            out_specs=[
                pl.BlockSpec((1, tc, D), lambda b, c: (b, c, 0)),
                pl.BlockSpec((1, tc, 1), lambda b, c: (b, c, 0)),
            ],
        ),
        compiler_params=pltpu.CompilerParams(
            dimension_semantics=("parallel", "parallel"),
            vmem_limit_bytes=vmem_limit,
        ),
        cost_estimate=cost,
    )(x_flat, g_aug)
    return coords, ent


def _reference(x, grids, beta):
    # Pure-JAX mirror of the PyTorch forward, for verification.
    B, C = x.shape[0], x.shape[1]
    N = int(np.prod(x.shape[2:]))
    xr = x.reshape(B, C, N, 1).astype(jnp.float32)
    p = jax.nn.softmax(beta * xr, axis=2)
    entropy = -jnp.sum(p * jnp.log(p + 1e-6), axis=2)          # (B, C, 1)
    g = grids[:, None, :, :].astype(jnp.float32)               # (B, 1, N, D)
    coords = jnp.sum(p * g, axis=2)                            # (B, C, D)
    return coords, entropy


if __name__ == "__main__":
    BETA = 100.0  # cfg.TRAIN.BETA
    B, C, H, W = 2, 4, 16, 16
    N, D = H * W, 2

    key = jax.random.PRNGKey(0)
    x = jax.random.normal(key, (B, C, H, W), dtype=jnp.float32)

    # Normalized (u, v) coordinate grid, identical across the batch.
    ys, xs = jnp.meshgrid(
        jnp.linspace(-1.0, 1.0, H), jnp.linspace(-1.0, 1.0, W), indexing="ij")
    grid_single = jnp.stack(
        [xs.reshape(-1), ys.reshape(-1)], axis=-1).astype(jnp.float32)   # (N, 2)
    grids_b = jnp.broadcast_to(grid_single[None], (B, N, D)).astype(jnp.float32)

    coords_ref, entropy_ref = _reference(x, grids_b, BETA)

    # Fast path: shared (N, D) grid, row-tiled over B*C.
    coords, entropy = soft_argmax(x, grid_single, beta=BETA)
    jax.block_until_ready((coords, entropy))
    assert coords.shape == (B, C, D) and entropy.shape == (B, C, 1)
    assert coords.dtype == jnp.float32 and entropy.dtype == jnp.float32
    np.testing.assert_allclose(np.asarray(coords), np.asarray(coords_ref),
                               rtol=1e-4, atol=1e-4)
    # Entropy differs from the PyTorch form only via the dropped +1e-6 eps.
    np.testing.assert_allclose(np.asarray(entropy), np.asarray(entropy_ref),
                               rtol=1e-3, atol=1e-3)

    # Exact module signature: per-batch (B, N, D) grids must agree.
    coords_b, entropy_b = soft_argmax(x, grids_b, beta=BETA)
    jax.block_until_ready((coords_b, entropy_b))
    np.testing.assert_allclose(np.asarray(coords_b), np.asarray(coords),
                               rtol=1e-6, atol=1e-6)
    np.testing.assert_allclose(np.asarray(entropy_b), np.asarray(entropy),
                               rtol=1e-6, atol=1e-6)

    # bf16 input path (halves HBM reads; math stays f32 in-kernel, f32 outputs).
    x_bf16 = x.astype(jnp.bfloat16)
    coords_h, entropy_h = soft_argmax(x_bf16, grid_single, beta=BETA)
    jax.block_until_ready((coords_h, entropy_h))
    assert coords_h.dtype == jnp.float32 and entropy_h.dtype == jnp.float32
    coords_ref_h, entropy_ref_h = _reference(
        x_bf16.astype(jnp.float32), grids_b, BETA)
    np.testing.assert_allclose(np.asarray(coords_h), np.asarray(coords_ref_h),
                               rtol=1e-4, atol=1e-4)
    np.testing.assert_allclose(np.asarray(entropy_h), np.asarray(entropy_ref_h),
                               rtol=1e-3, atol=1e-3)

    print("KERNEL_OK")
</pallas_src>

<mosaic_0001>
module attributes {stable_mosaic.version = 11 : i64} {
  func.func @_soft_argmax_kernel(%arg0: i32, %arg1: memref<8x256xf32, #tpu.memory_space<vmem>>, %arg2: memref<256x3xf32, #tpu.memory_space<vmem>>, %arg3: memref<8x2xf32, #tpu.memory_space<vmem>>, %arg4: memref<8x1xf32, #tpu.memory_space<vmem>>) attributes {dimension_semantics = [#tpu.dimension_semantics<parallel>], iteration_bounds = array<i64: 1>, scalar_prefetch = 0 : i64, scratch_operands = 0 : i64, tpu.core_type = #tpu.core_type<tc>, window_params = [{transform_indices = @transform_0, window_bounds = array<i64: 8, 256>}, {pipeline_mode = #tpu.pipeline_mode<synchronous>, transform_indices = @transform_1, window_bounds = array<i64: 256, 3>}, {transform_indices = @transform_2, window_bounds = array<i64: 8, 2>}, {transform_indices = @transform_3, window_bounds = array<i64: 8, 1>}]} {
    %c0 = arith.constant 0 : index
    %c0_0 = arith.constant 0 : index
    %0 = vector.load %arg1[%c0, %c0_0] : memref<8x256xf32, #tpu.memory_space<vmem>>, vector<8x256xf32>
    %c0_1 = arith.constant 0 : index
    %c0_2 = arith.constant 0 : index
    %1 = vector.load %arg2[%c0_1, %c0_2] : memref<256x3xf32, #tpu.memory_space<vmem>>, vector<256x3xf32>
    %cst = arith.constant 1.000000e+02 : f32
    %2 = vector.broadcast %cst : f32 to vector<8x256xf32>
    %3 = arith.mulf %2, %0 : vector<8x256xf32>
    %cst_3 = arith.constant dense<0xFF800000> : vector<8xf32>
    %4 = vector.multi_reduction <maximumf>, %3, %cst_3 [1] : vector<8x256xf32> to vector<8xf32>
    %5 = vector.shape_cast %4 : vector<8xf32> to vector<8x1xf32>
    %6 = vector.broadcast %5 : vector<8x1xf32> to vector<8x256xf32>
    %7 = arith.subf %3, %6 : vector<8x256xf32>
    %8 = math.exp %7 : vector<8x256xf32>
    %cst_4 = arith.constant dense<0.000000e+00> : vector<8x3xf32>
    %9 = tpu.matmul %8, %1, %cst_4 {dimension_numbers = #tpu.dot_dimension_numbers<[1], [0], [0], [1], [0, 0, 1, 1], [], []>, precision = #tpu.contract_precision<fp32>} : vector<8x256xf32>, vector<256x3xf32>, vector<8x3xf32> -> vector<8x3xf32>
    %10 = vector.extract_strided_slice %9 {offsets = [0, 0], sizes = [8, 2], strides = [1, 1]} : vector<8x3xf32> to vector<8x2xf32>
    %11 = vector.extract_strided_slice %9 {offsets = [0, 2], sizes = [8, 1], strides = [1, 1]} : vector<8x3xf32> to vector<8x1xf32>
    %12 = arith.mulf %8, %7 : vector<8x256xf32>
    %cst_5 = arith.constant dense<0.000000e+00> : vector<8x3xf32>
    %13 = tpu.matmul %12, %1, %cst_5 {dimension_numbers = #tpu.dot_dimension_numbers<[1], [0], [0], [1], [0, 0, 1, 1], [], []>, precision = #tpu.contract_precision<fp32>} : vector<8x256xf32>, vector<256x3xf32>, vector<8x3xf32> -> vector<8x3xf32>
    %14 = vector.extract_strided_slice %13 {offsets = [0, 2], sizes = [8, 1], strides = [1, 1]} : vector<8x3xf32> to vector<8x1xf32>
    %15 = tpu.reciprocal %11 {approx = true} : vector<8x1xf32> -> vector<8x1xf32>
    %16 = arith.mulf %11, %15 : vector<8x1xf32>
    %cst_6 = arith.constant 2.000000e+00 : f32
    %17 = vector.broadcast %cst_6 : f32 to vector<8x1xf32>
    %18 = arith.subf %17, %16 : vector<8x1xf32>
    %19 = arith.mulf %15, %18 : vector<8x1xf32>
    %20 = vector.broadcast %19 : vector<8x1xf32> to vector<8x2xf32>
    %21 = arith.mulf %10, %20 : vector<8x2xf32>
    %22 = math.log %11 : vector<8x1xf32>
    %23 = arith.mulf %19, %14 : vector<8x1xf32>
    %24 = arith.subf %22, %23 : vector<8x1xf32>
    %c0_7 = arith.constant 0 : index
    %c0_8 = arith.constant 0 : index
    %25 = vector.load %arg3[%c0_7, %c0_8] : memref<8x2xf32, #tpu.memory_space<vmem>>, vector<8x2xf32>
    tpu.vector_store %arg3[%c0_7, %c0_8], %21 {strides = array<i32>} : memref<8x2xf32, #tpu.memory_space<vmem>>, vector<8x2xf32>,
    %c0_9 = arith.constant 0 : index
    %c0_10 = arith.constant 0 : index
    %26 = vector.load %arg4[%c0_9, %c0_10] : memref<8x1xf32, #tpu.memory_space<vmem>>, vector<8x1xf32>
    tpu.vector_store %arg4[%c0_9, %c0_10], %24 {strides = array<i32>} : memref<8x1xf32, #tpu.memory_space<vmem>>, vector<8x1xf32>,
    return
  }
  func.func @transform_0(%arg0: i32) -> (i32, i32) {
    %c0_i32 = arith.constant 0 : i32
    %c0_i32_0 = arith.constant 0 : i32
    return %arg0, %c0_i32 : i32, i32
  }
  func.func @transform_1(%arg0: i32) -> (i32, i32) {
    %c0_i32 = arith.constant 0 : i32
    %c0_i32_0 = arith.constant 0 : i32
    %c0_i32_1 = arith.constant 0 : i32
    return %c0_i32, %c0_i32_0 : i32, i32
  }
  func.func @transform_2(%arg0: i32) -> (i32, i32) {
    %c0_i32 = arith.constant 0 : i32
    %c0_i32_0 = arith.constant 0 : i32
    return %arg0, %c0_i32 : i32, i32
  }
  func.func @transform_3(%arg0: i32) -> (i32, i32) {
    %c0_i32 = arith.constant 0 : i32
    %c0_i32_0 = arith.constant 0 : i32
    return %arg0, %c0_i32 : i32, i32
  }
}

</mosaic_0001>

<bundles_post_ra>
// kernel: tpu_custom_call.1
= control target key start
LH: loop header
LB: loop body
LE: loop exit
PB: predicated region body
PF: predicated region fallthrough
CT: control target
= control target key end

     0   :  { %vm1798_vm0 = vcmask 15360   ;;  %vm1804_vm1 = vcmask 7168   ;;  %s3366_s0 = inlined_call_operand.vmem [shape: f32[8,256], index: 0, kind: input, shape index: {}]   ;;  %s3367_s1 = inlined_call_operand.vmem [shape: f32[256,3], index: 1, kind: input, shape index: {}]   ;;  %s3368_s2 = inlined_call_operand.vmem [shape: f32[8,2], index: 2, kind: output, shape index: {0}]   ;;  %s3369_s3 = inlined_call_operand.vmem [shape: f32[8,1], index: 3, kind: output, shape index: {1}]  }
   0x1   :  { %v13_v0 = vld [vmem:[%s3366_s0] sm:$0xff]  ;;  %v14_v1 = vld [vmem:[%s3366_s0 + $0x8] sm:$0xff]  ;;  %v33_v12 = vld [vmem:[%s3367_s1 + $0x90] sm:$0xff] }
   0x2   :  { %v31_v2 = vld [vmem:[%s3367_s1 + $0x80] sm:$0xff]  ;;  %v2660_v3 = vmul.f32 100.0, %v13_v0  ;;  %v2662_v4 = vmul.f32 100.0, %v14_v1  ;;  %v32_v5 = vld [vmem:[%s3367_s1 + $0x88] sm:$0xff]  ;;  %v34_v13 = vld [vmem:[%s3367_s1 + $0x98] sm:$0xff]  ;;  %v113_v16 = vand.u32 4294901760, %v33_v12 }
   0x3   :  { %v107_v6 = vand.u32 4294901760, %v31_v2  ;;  %v15_v7 = vld [vmem:[%s3367_s1] sm:$0xff]  ;;  %v16_v8 = vld [vmem:[%s3367_s1 + $0x8] sm:$0xff]  ;;  %v110_v9 = vand.u32 4294901760, %v32_v5  ;;  %v116_v17 = vand.u32 4294901760, %v34_v13  ;;  %v17_v18 = vld [vmem:[%s3367_s1 + $0x10] sm:$0xff] }
   0x4   :  { %v59_v10 = vand.u32 4294901760, %v15_v7  ;;  %v62_v11 = vand.u32 4294901760, %v16_v8  ;;  %v49_v14 = vmax.f32 %v2660_v3, %v2662_v4  ;;  %v18_v23 = vld [vmem:[%s3367_s1 + $0x18] sm:$0xff]  ;;  %v2702_v27 = vsub.f32 %v33_v12, %v113_v16  ;;  %v35_v40 = vld [vmem:[%s3367_s1 + $0xa0] sm:$0xff]  ;;  %v36_v45 = vld [vmem:[%s3367_s1 + $0xa8] sm:$0xff] }
   0x5   :  { %v2681_v15 = vsub.f32 %v31_v2, %v107_v6  ;;  %v2686_v19 = vpack.c.bf16 %v110_v9, %v107_v6  ;;  %v2688_v20 = vsub.f32 %v32_v5, %v110_v9  ;;  %v2700_v26 = vpack.c.bf16 %v116_v17, %v113_v16  ;;  %v19_v50 = vld [vmem:[%s3367_s1 + $0x20] sm:$0xff]  ;;  %v20_v59 = vld [vmem:[%s3367_s1 + $0x28] sm:$0xff]  ;;  %v37_v0 = vld [vmem:[%s3367_s1 + $0xb0] sm:$0xff] }
   0x6   :  { %v2690_v21 = vpack.c.bf16 %v62_v11, %v59_v10  ;;  %v2692_v22 = vsub.f32 %v15_v7, %v59_v10  ;;  %50 = vmax.xlane.f32.xlu0 %v49_v14  ;;  %v2698_v25 = vsub.f32 %v16_v8, %v62_v11  ;;  %v2706_v30 = vsub.f32 %v34_v13, %v116_v17  ;;  %v38_v1 = vld [vmem:[%s3367_s1 + $0xb8] sm:$0xff]  ;;  %v21_v2 = vld [vmem:[%s3367_s1 + $0x30] sm:$0xff] }
   0x7   :  { %v3383_v24 = vand.u32 4294901760, %v2681_v15  ;;  %v3382_v28 = vand.u32 4294901760, %v2688_v20  ;;  %v65_v31 = vand.u32 4294901760, %v17_v18  ;;  %2235 = vmatprep.subr.bf16.mxu0 %v2686_v19  ;;  %v3379_v34 = vand.u32 4294901760, %v2702_v27 }
   0x8   :  { %v3381_v29 = vand.u32 4294901760, %v2692_v22  ;;  %v3380_v33 = vand.u32 4294901760, %v2698_v25  ;;  %v68_v35 = vand.u32 4294901760, %v18_v23  ;;  %2237 = vmatpush3.bf16.msra.mxu0 %v2690_v21  ;;  %v3378_v38 = vand.u32 4294901760, %v2706_v30 }
   0x9   :  { %v286_v32 = vsub.f32 %v2681_v15, %v3383_v24  ;;  %v293_v36 = vsub.f32 %v2688_v20, %v3382_v28  ;;  %v2722_v39 = vsub.f32 %v17_v18, %v65_v31  ;;  %2239 = vmatprep.subr.bf16.mxu0 %v2700_v26  ;;  %v300_v43 = vsub.f32 %v2702_v27, %v3379_v34 }
   0xa   :  { %v174_v37 = vsub.f32 %v2692_v22, %v3381_v29  ;;  %v181_v42 = vsub.f32 %v2698_v25, %v3380_v33  ;;  %v2734_v44 = vpack.c.bf16 %v68_v35, %v65_v31  ;;  %v307_v48 = vsub.f32 %v2706_v30, %v3378_v38 }
   0xb   :  { %3430 = vst [vmem:[#allocation2_spill] sm:$0xff] %v2722_v39  ;;  %v287_v41 = vand.u32 4294901760, %v286_v32  ;;  %v294_v46 = vand.u32 4294901760, %v293_v36  ;;  %v3377_v49 = vand.u32 4294901760, %v2722_v39  ;;  %v301_v52 = vand.u32 4294901760, %v300_v43 }
   0xc   :  { %v175_v47 = vand.u32 4294901760, %v174_v37  ;;  %v182_v51 = vand.u32 4294901760, %v181_v42  ;;  %v2746_v53 = vsub.f32 %v18_v23, %v68_v35  ;;  %v119_v54 = vand.u32 4294901760, %v35_v40  ;;  %2241 = vmatpush3.bf16.msra.mxu0 %v2734_v44  ;;  %v22_v35 = vld [vmem:[%s3367_s1 + $0x38] sm:$0xff]  ;;  %v39_v42 = vld [vmem:[%s3367_s1 + $0xc0] sm:$0xff] }
   0xd   :  { %v2749_v55 = vpack.c.bf16 %v294_v46, %v287_v41  ;;  %v308_v56 = vand.u32 4294901760, %v307_v48  ;;  %v188_v57 = vsub.f32 %v2722_v39, %v3377_v49  ;;  %v122_v58 = vand.u32 4294901760, %v36_v45 }
   0xe   :  { %3431 = vst [vmem:[#allocation3_spill] sm:$0xff] %v2746_v53  ;;  %v2757_v60 = vpack.c.bf16 %v182_v51, %v175_v47  ;;  %v3376_v61 = vand.u32 4294901760, %v2746_v53  ;;  %v2760_v62 = vsub.f32 %v35_v40, %v119_v54  ;;  %v71_v63 = vand.u32 4294901760, %v19_v50 }
   0xf   :  { %3432 = vst [vmem:[#allocation4_spill] sm:$0xff] %v2749_v55  ;;  %2267 = vmatprep.subr.bf16.mxu1 %v2749_v55  ;;  %v2772_v5 = vpack.c.bf16 %v308_v56, %v301_v52  ;;  %v189_v6 = vand.u32 4294901760, %v188_v57  ;;  %v2774_v7 = vpack.c.bf16 %v122_v58, %v119_v54  ;;  %v2776_v8 = vsub.f32 %v36_v45, %v122_v58  ;;  %v40_v54 = vld [vmem:[%s3367_s1 + $0xc8] sm:$0xff] }
  0x10   :  { %3433 = vst [vmem:[#allocation5_spill] sm:$0xff] %v2757_v60  ;;  %3434 = vst [vmem:[#allocation6_spill] sm:$0xff] %v2760_v62  ;;  %2269 = vmatpush3.bf16.msra.mxu1 %v2757_v60  ;;  %v195_v9 = vsub.f32 %v2746_v53, %v3376_v61  ;;  %v3375_v10 = vand.u32 4294901760, %v2760_v62  ;;  %v74_v11 = vand.u32 4294901760, %v20_v59  ;;  %v2783_v12 = vsub.f32 %v19_v50, %v71_v63  ;;  %v26_v61 = vld [vmem:[%s3367_s1 + $0x58] sm:$0xff] }
  0x11   :  { %3435 = vst [vmem:[#allocation7_spill] sm:$0xff] %v2772_v5  ;;  %3436 = vst [vmem:[#allocation8_spill] sm:$0xff] %v2776_v8  ;;  %2271 = vmatprep.subr.bf16.mxu1 %v2772_v5  ;;  %v3374_v13 = vand.u32 4294901760, %v2776_v8  ;;  %v125_v14 = vand.u32 4294901760, %v37_v0  ;;  %v128_v16 = vand.u32 4294901760, %v38_v1  ;;  %v77_v17 = vand.u32 4294901760, %v21_v2  ;;  %2243 = vmatprep.subr.bf16.mxu0 %v2774_v7 }
  0x12   :  { %3437 = vst [vmem:[#allocation9_spill] sm:$0xff] %v2783_v12  ;;  %v196_v18 = vand.u32 4294901760, %v195_v9  ;;  %v314_v23 = vsub.f32 %v2760_v62, %v3375_v10  ;;  %v2791_v31 = vpack.c.bf16 %v74_v11, %v71_v63  ;;  %v3373_v32 = vand.u32 4294901760, %v2783_v12  ;;  %v23_v63 = vld [vmem:[%s3367_s1 + $0x40] sm:$0xff]  ;;  %v29_v5 = vld [vmem:[%s3367_s1 + $0x70] sm:$0xff] }
  0x13   :  { %v321_v36 = vsub.f32 %v2776_v8, %v3374_v13  ;;  %v2800_v37 = vsub.f32 %v20_v59, %v74_v11  ;;  %v2802_v40 = vpack.c.bf16 %v128_v16, %v125_v14  ;;  %v2804_v41 = vsub.f32 %v37_v0, %v125_v14 }
  0x14   :  { %v2809_v43 = vpack.c.bf16 %v196_v18, %v189_v6  ;;  %v315_v45 = vand.u32 4294901760, %v314_v23  ;;  %v202_v46 = vsub.f32 %v2783_v12, %v3373_v32  ;;  %v2814_v47 = vsub.f32 %v38_v1, %v128_v16  ;;  %2245 = vmatpush3.bf16.msra.mxu0 %v2791_v31  ;;  %v24_v18 = vld [vmem:[%s3367_s1 + $0x48] sm:$0xff] }
  0x15   :  { %3438 = vst [vmem:[#allocation10_spill] sm:$0xff] %v2800_v37  ;;  %3439 = vst [vmem:[#allocation11_spill] sm:$0xff] %v2804_v41  ;;  %v322_v48 = vand.u32 4294901760, %v321_v36  ;;  %v3372_v50 = vand.u32 4294901760, %v2800_v37  ;;  %v3371_v51 = vand.u32 4294901760, %v2804_v41  ;;  %v80_v52 = vand.u32 4294901760, %v22_v35  ;;  %2247 = vmatprep.subr.bf16.mxu0 %v2802_v40 }
  0x16   :  { %3440 = vst [vmem:[#allocation12_spill] sm:$0xff] %v2809_v43  ;;  %3441 = vst [vmem:[#allocation13_spill] sm:$0xff] %v2814_v47  ;;  %2273 = vmatpush3.bf16.msra.mxu1 %v2809_v43  ;;  %v203_v56 = vand.u32 4294901760, %v202_v46  ;;  %v3370_v57 = vand.u32 4294901760, %v2814_v47  ;;  %v2825_v58 = vsub.f32 %v21_v2, %v77_v17  ;;  %v131_v59 = vand.u32 4294901760, %v39_v42 }
  0x17   :  { %v2830_v0 = vpack.c.bf16 %v322_v48, %v315_v45  ;;  %v209_v1 = vsub.f32 %v2800_v37, %v3372_v50  ;;  %v328_v6 = vsub.f32 %v2804_v41, %v3371_v51  ;;  %v2838_v9 = vpack.c.bf16 %v80_v52, %v77_v17 }
  0x18   :  { %v335_v2 = vsub.f32 %v2814_v47, %v3370_v57  ;;  %v3389_v11 = vand.u32 4294901760, %v2825_v58  ;;  %v2844_v14 = vsub.f32 %v22_v35, %v80_v52  ;;  %v134_v16 = vand.u32 4294901760, %v40_v54 }
  0x19   :  { %3442 = vst [vmem:[#allocation14_spill] sm:$0xff] %v2830_v0  ;;  %2275 = vmatprep.subr.bf16.mxu1 %v2830_v0  ;;  %v210_v23 = vand.u32 4294901760, %v209_v1  ;;  %v329_v36 = vand.u32 4294901760, %v328_v6  ;;  %v2850_v45 = vsub.f32 %v39_v42, %v131_v59  ;;  %v83_v17 = vand.u32 4294901760, %v23_v63  ;;  %2249 = vmatpush3.bf16.msra.mxu0 %v2838_v9  ;;  %v41_v42 = vld [vmem:[%s3367_s1 + $0xd0] sm:$0xff] }
  0x1a   :  { %v336_v46 = vand.u32 4294901760, %v335_v2  ;;  %v216_v35 = vsub.f32 %v2825_v58, %v3389_v11  ;;  %v3388_v48 = vand.u32 4294901760, %v2844_v14  ;;  %v2857_v52 = vsub.f32 %v40_v54, %v134_v16  ;;  %v42_v2 = vld [vmem:[%s3367_s1 + $0xd8] sm:$0xff] }
  0x1b   :  { %v2859_v57 = vpack.c.bf16 %v210_v23, %v203_v56  ;;  %v3386_v51 = vand.u32 4294901760, %v2850_v45  ;;  %v86_v1 = vand.u32 4294901760, %v24_v18  ;;  %v2862_v6 = vsub.f32 %v23_v63, %v83_v17  ;;  %v25_v63 = vld [vmem:[%s3367_s1 + $0x50] sm:$0xff] }
  0x1c   :  { %v2870_v50 = vpack.c.bf16 %v336_v46, %v329_v36  ;;  %v217_v32 = vand.u32 4294901760, %v216_v35  ;;  %v223_v54 = vsub.f32 %v2844_v14, %v3388_v48  ;;  %v2875_v56 = vpack.c.bf16 %v134_v16, %v131_v59 }
  0x1d   :  { %3443 = vst [vmem:[#allocation15_spill] sm:$0xff] %v2859_v57  ;;  %2277 = vmatpush3.bf16.msra.mxu1 %v2859_v57  ;;  %v342_v23 = vsub.f32 %v2850_v45, %v3386_v51  ;;  %v3385_v36 = vand.u32 4294901760, %v2857_v52  ;;  %v2885_v46 = vpack.c.bf16 %v86_v1, %v83_v17  ;;  %v3384_v35 = vand.u32 4294901760, %v2862_v6 }
  0x1e   :  { %3444 = vst [vmem:[#allocation16_spill] sm:$0xff] %v2870_v50  ;;  %2279 = vmatprep.subr.bf16.mxu1 %v2870_v50  ;;  %v224_v59 = vand.u32 4294901760, %v223_v54  ;;  %v2889_v16 = vsub.f32 %v24_v18, %v86_v1  ;;  %v137_v13 = vand.u32 4294901760, %v41_v42  ;;  %v140_v10 = vand.u32 4294901760, %v42_v2  ;;  %2251 = vmatprep.subr.bf16.mxu0 %v2875_v56  ;;  %v43_v18 = vld [vmem:[%s3367_s1 + $0xe0] sm:$0xff] }
  0x1f   :  { %v343_v49 = vand.u32 4294901760, %v342_v23  ;;  %v349_v17 = vsub.f32 %v2857_v52, %v3385_v36  ;;  %v230_v38 = vsub.f32 %v2862_v6, %v3384_v35  ;;  %v89_v54 = vand.u32 4294901760, %v25_v63  ;;  %2253 = vmatpush3.bf16.msra.mxu0 %v2885_v46  ;;  %v44_v36 = vld [vmem:[%s3367_s1 + $0xe8] sm:$0xff] }
  0x20   :  { %v2905_v1 = vpack.c.bf16 %v224_v59, %v217_v32  ;;  %v3387_v34 = vand.u32 4294901760, %v2889_v16  ;;  %v2908_v23 = vpack.c.bf16 %v140_v10, %v137_v13  ;;  %v2910_v33 = vsub.f32 %v41_v42, %v137_v13 }
  0x21   :  { %v350_v29 = vand.u32 4294901760, %v349_v17  ;;  %v231_v28 = vand.u32 4294901760, %v230_v38  ;;  %v2912_v24 = vsub.f32 %v42_v2, %v140_v10  ;;  %v92_v35 = vand.u32 4294901760, %v26_v61  ;;  %v27_v38 = vld [vmem:[%s3367_s1 + $0x60] sm:$0xff] }
  0x22   :  { %3445 = vst [vmem:[#allocation17_spill] sm:$0xff] %v2905_v1  ;;  %3446 = vst [vmem:[#allocation18_spill] sm:$0xff] %v2908_v23  ;;  %2281 = vmatpush3.bf16.msra.mxu1 %v2905_v1  ;;  %v237_v32 = vsub.f32 %v2889_v16, %v3387_v34  ;;  %v3390_v59 = vand.u32 4294901760, %v2910_v33  ;;  %v2922_v51 = vsub.f32 %v25_v63, %v89_v54  ;;  %v143_v13 = vand.u32 4294901760, %v43_v18 }
  0x23   :  { %2255 = vmatprep.subr.bf16.mxu0 %v2908_v23  ;;  %v2928_v10 = vpack.c.bf16 %v350_v29, %v343_v49  ;;  %v3391_v42 = vand.u32 4294901760, %v2912_v24  ;;  %v2931_v2 = vpack.c.bf16 %v92_v35, %v89_v54  ;;  %v2933_v17 = vsub.f32 %v26_v61, %v92_v35  ;;  %v28_v61 = vld [vmem:[%s3367_s1 + $0x68] sm:$0xff] }
  0x24   :  { %v238_v34 = vand.u32 4294901760, %v237_v32  ;;  %v356_v63 = vsub.f32 %v2910_v33, %v3390_v59  ;;  %v146_v11 = vand.u32 4294901760, %v44_v36  ;;  %v2944_v54 = vsub.f32 %v43_v18, %v143_v13  ;;  %v45_v32 = vld [vmem:[%s3367_s1 + $0xf0] sm:$0xff] }
  0x25   :  { %3447 = vst [vmem:[#allocation19_spill] sm:$0xff] %v2928_v10  ;;  %3448 = vst [vmem:[#allocation20_spill] sm:$0xff] %v2931_v2  ;;  %2283 = vmatprep.subr.bf16.mxu1 %v2928_v10  ;;  %v363_v29 = vsub.f32 %v2912_v24, %v3391_v42  ;;  %v95_v35 = vand.u32 4294901760, %v27_v38  ;;  %2257 = vmatpush3.bf16.msra.mxu0 %v2931_v2  ;;  %v3450_v42 = vand.u32 4294901760, %v2922_v51  ;;  %v3452_v1 = vand.u32 4294901760, %v2933_v17 }
  0x26   :  { %v2953_v59 = vpack.c.bf16 %v238_v34, %v231_v28  ;;  %v357_v48 = vand.u32 4294901760, %v356_v63  ;;  %v2958_v18 = vpack.c.bf16 %v146_v11, %v143_v13  ;;  %v3400_v57 = vand.u32 4294901760, %v2944_v54  ;;  %v46_v28 = vld [vmem:[%s3367_s1 + $0xf8] sm:$0xff] }
  0x27   :  { %v244_v49 = vsub.f32 %v2922_v51, %v3450_v42  ;;  %v364_v10 = vand.u32 4294901760, %v363_v29  ;;  %v251_v50 = vsub.f32 %v2933_v17, %v3452_v1  ;;  %v2964_v0 = vsub.f32 %v44_v36, %v146_v11 }
  0x28   :  { %3449 = vst [vmem:[#allocation21_spill] sm:$0xff] %v2953_v59  ;;  %3451 = vst [vmem:[#allocation22_spill] sm:$0xff] %v2958_v18  ;;  %2285 = vmatpush3.bf16.msra.mxu1 %v2953_v59  ;;  %v98_v63 = vand.u32 4294901760, %v28_v61  ;;  %v2970_v42 = vsub.f32 %v27_v38, %v95_v35  ;;  %v149_v13 = vand.u32 4294901760, %v45_v32  ;;  %2259 = vmatprep.subr.bf16.mxu0 %v2958_v18  ;;  %v152_v38 = vand.u32 4294901760, %v46_v28 }
  0x29   :  { %v245_v34 = vand.u32 4294901760, %v244_v49  ;;  %v2973_v29 = vpack.c.bf16 %v364_v10, %v357_v48  ;;  %v252_v1 = vand.u32 4294901760, %v251_v50  ;;  %v370_v11 = vsub.f32 %v2944_v54, %v3400_v57  ;;  %v30_v50 = vld [vmem:[%s3367_s1 + $0x78] sm:$0xff]  ;;  %s2630_s1 = smov 126  }
  0x2a   :  { %v3403_v36 = vand.u32 4294901760, %v2964_v0  ;;  %v2979_v43 = vpack.c.bf16 %v98_v63, %v95_v35  ;;  %v3407_v59 = vand.u32 4294901760, %v2970_v42  ;;  %v2982_v49 = vsub.f32 %v28_v61, %v98_v63 }
  0x2b   :  { %3453 = vst [vmem:[#allocation23_spill] sm:$0xff] %v2973_v29  ;;  %2287 = vmatprep.subr.bf16.mxu1 %v2973_v29  ;;  %v2991_v48 = vpack.c.bf16 %v252_v1, %v245_v34  ;;  %v371_v10 = vand.u32 4294901760, %v370_v11  ;;  %v2996_v61 = vsub.f32 %v45_v32, %v149_v13  ;;  %v3002_v60 = vpack.c.bf16 %v152_v38, %v149_v13 }
  0x2c   :  { %3454 = vst [vmem:[#allocation24_spill] sm:$0xff] %v2979_v43  ;;  %v377_v35 = vsub.f32 %v2964_v0, %v3403_v36  ;;  %v258_v63 = vsub.f32 %v2970_v42, %v3407_v59  ;;  %v264_v57 = vand.u32 4294901760, %v2982_v49  ;;  %v389_v55 = vsub.f32 %v46_v28, %v152_v38  ;;  %2261 = vmatpush3.bf16.msra.mxu0 %v2979_v43 }
  0x2d   :  { %3455 = vst [vmem:[#allocation25_spill] sm:$0xff] %v2991_v48  ;;  %3456 = vst [vmem:[#allocation26_spill] sm:$0xff] %v3002_v60  ;;  %2289 = vmatpush3.bf16.msra.mxu1 %v2991_v48  ;;  %v383_v1 = vand.u32 4294901760, %v2996_v61  ;;  %v101_v11 = vand.u32 4294901760, %v29_v5  ;;  %v104_v36 = vand.u32 4294901760, %v30_v50  ;;  %2263 = vmatprep.subr.bf16.mxu0 %v3002_v60  ;;  %v3011_v13 = vpack.c.bf16 %v2688_v20, %v2681_v15 }
  0x2e   :  { %v378_v34 = vand.u32 4294901760, %v377_v35  ;;  %v259_v32 = vand.u32 4294901760, %v258_v63  ;;  %v265_v29 = vsub.f32 %v2982_v49, %v264_v57  ;;  %v390_v18 = vand.u32 4294901760, %v389_v55 }
  0x2f   :  { %3457 = vst [vmem:[#allocation27_spill] sm:$0xff] %v3011_v13  ;;  %v384_v38 = vsub.f32 %v2996_v61, %v383_v1  ;;  %v3016_v59 = vpack.c.bf16 %v104_v36, %v101_v11  ;;  %v270_v35 = vsub.f32 %v29_v5, %v101_v11  ;;  %v277_v2 = vsub.f32 %v30_v50, %v104_v36 }
  0x30   :  { %v3013_v28 = vpack.c.bf16 %v378_v34, %v371_v10  ;;  %v266_v48 = vand.u32 4294901760, %v265_v29  ;;  %v391_v43 = vsub.f32 %v389_v55, %v390_v18  ;;  %v3020_v63 = vpack.c.bf16 %v2698_v25, %v2692_v22 }
  0x31   :  { %v385_v60 = vand.u32 4294901760, %v384_v38  ;;  %v271_v23 = vand.u32 4294901760, %v270_v35  ;;  %2265 = vmatpush3.bf16.msra.mxu0 %v3016_v59  ;;  %v3026_v10 = vpack.c.bf16 %v2706_v30, %v2702_v27  ;;  %v278_v29 = vand.u32 4294901760, %v277_v2 }
  0x32   :  { %3458 = vst [vmem:[#allocation28_spill] sm:$0xff] %v3013_v28  ;;  %2291 = vmatprep.subr.bf16.mxu1 %v3013_v28  ;;  %v3028_v34 = vpack.c.bf16 %v266_v48, %v259_v32  ;;  %v392_v5 = vand.u32 4294901760, %v391_v43  ;;  %2299 = vmatprep.subr.bf16.mxu0 %v3011_v13  ;;  %v3033_v36 = vpack.c.bf16 %v2746_v53, %v2722_v39  ;;  %v3467_v39 = vand.u32 4294901760, %v2889_v16 }
  0x33   :  { %v272_v50 = vsub.f32 %v270_v35, %v271_v23  ;;  %v279_v38 = vsub.f32 %v277_v2, %v278_v29  ;;  %v3040_v28 = vpack.c.bf16 %v2776_v8, %v2760_v62  ;;  %v3044_v43 = vpack.c.bf16 %v2800_v37, %v2783_v12 }
  0x34   :  { %3459 = vst [vmem:[#allocation29_spill] sm:$0xff] %v3028_v34  ;;  %2293 = vmatpush3.bf16.msra.mxu1 %v3028_v34  ;;  %v3036_v11 = vpack.c.bf16 %v392_v5, %v385_v60  ;;  %v3051_v34 = vpack.c.bf16 %v2814_v47, %v2804_v41  ;;  %v3055_v60 = vpack.c.bf16 %v2844_v14, %v2825_v58  ;;  %v3462_v41 = vand.u32 4294901760, %v2825_v58 }
  0x35   :  { %v273_v48 = vand.u32 4294901760, %v272_v50  ;;  %v280_v32 = vand.u32 4294901760, %v279_v38  ;;  %v3061_v5 = vpack.c.bf16 %v2857_v52, %v2850_v45  ;;  %v3065_v50 = vpack.c.bf16 %v2889_v16, %v2862_v6 }
  0x36   :  { %3460 = vst [vmem:[#allocation30_spill] sm:$0xff] %v3036_v11  ;;  %2295 = vmatprep.subr.bf16.mxu1 %v3036_v11  ;;  %v3069_v38 = vpack.c.bf16 %v2912_v24, %v2910_v33  ;;  %v3084_v11 = vpack.c.bf16 %v389_v55, %v2996_v61  ;;  %v3086_v47 = vpack.c.bf16 %v277_v2, %v270_v35  ;;  %v3463_v37 = vand.u32 4294901760, %v2844_v14 }
  0x37   :  { %v3047_v13 = vpack.c.bf16 %v280_v32, %v273_v48  ;;  %v3073_v48 = vpack.c.bf16 %v2933_v17, %v2922_v51  ;;  %v3077_v32 = vpack.c.bf16 %v2964_v0, %v2944_v54  ;;  %v3464_v8 = vand.u32 4294901760, %v2850_v45 }
  0x38   :  { %v3092_v12 = vpack.c.bf16 %v3463_v37, %v3462_v41  ;;  %v3465_v62 = vand.u32 4294901760, %v2857_v52  ;;  %v3468_v2 = vand.u32 4294901760, %v2910_v33  ;;  %v3469_v58 = vand.u32 4294901760, %v2912_v24 }
  0x39   :  { %3461 = vst [vmem:[#allocation31_spill] sm:$0xff] %v3047_v13  ;;  %2297 = vmatpush3.bf16.msra.mxu1 %v3047_v13  ;;  %v3081_v13 = vpack.c.bf16 %v2982_v49, %v2970_v42  ;;  %v3466_v49 = vand.u32 4294901760, %v2862_v6  ;;  %v3470_v37 = vand.u32 4294901760, %v2922_v51  ;;  %v3471_v41 = vand.u32 4294901760, %v2933_v17 }
  0x3a   :  { %2331 = vmatprep.subr.bf16.mxu1 %v2686_v19  ;;  %v3098_v53 = vpack.c.bf16 %v3465_v62, %v3464_v8  ;;  %v3110_v61 = vpack.c.bf16 %v3469_v58, %v3468_v2  ;;  %v3472_v62 = vand.u32 4294901760, %v2944_v54  ;;  %v3473_v8 = vand.u32 4294901760, %v2964_v0 }
  0x3b   :  { %v3104_v55 = vpack.c.bf16 %v3467_v39, %v3466_v49  ;;  %v3116_v14 = vpack.c.bf16 %v3471_v41, %v3470_v37  ;;  %v3474_v39 = vand.u32 4294901760, %v2970_v42  ;;  %v3128_v33 = vpack.c.bf16 %v390_v18, %v383_v1  ;;  %v3475_v41 = vld [vmem:[#allocation18_spill] sm:$0xff] }
  0x3c   :  { %v3122_v45 = vpack.c.bf16 %v3473_v8, %v3472_v62  ;;  %v3130_v24 = vpack.c.bf16 %v278_v29, %v271_v23  ;;  %v3476_v62 = vld [vmem:[#allocation20_spill] sm:$0xff]  ;;  %v3477_v8 = vld [vmem:[#allocation22_spill] sm:$0xff] }
  0x3d   :  { %v3126_v52 = vpack.c.bf16 %v264_v57, %v3474_v39  ;;  %v3478_v39 = vld [vmem:[#allocation24_spill] sm:$0xff] }
  0x93   :  { %v51_v6 = vpop.xlane.xlu0 %50 }
  0x94   :  { %v52_v51 = vsub.f32 %v2660_v3, %v51_v6  ;;  %v53_v16 = vsub.f32 %v2662_v4, %v51_v6  ;;  %v3479_v6 = vld [vmem:[#allocation26_spill] sm:$0xff] }
  0x96   :  { %v54_v17 = vmul.f32 1.442695, %v52_v51  ;;  %v56_v35 = vmul.f32 1.442695, %v53_v16 }
  0x98   :  { %2621 = vpow2.f32 %v54_v17 }
  0x99   :  { %2623 = vpow2.f32 %v56_v35  ;;  %v3482_v35 = vand.u32 4294901760, %v2692_v22 }
  0xa2   :  { %v2622_v0 = vpop.eup %2621 }
  0xa3   :  { %v2624_v54 = vpop.eup %2623  ;;  %v3134_v49 = vmul.f32 %v2622_v0, %v52_v51  ;;  %v3136_v42 = vand.u32 4294901760, %v2622_v0  ;;  %v3480_v51 = vand.u32 4294901760, %v2681_v15  ;;  %v3484_v15 = vand.u32 4294901760, %v2702_v27 }
  0xa4   :  { %v3138_v57 = vmul.f32 %v2624_v54, %v53_v16  ;;  %v154_v18 = vand.u32 4294901760, %v2624_v54  ;;  %v3481_v16 = vand.u32 4294901760, %v2688_v20  ;;  %v3485_v20 = vand.u32 4294901760, %v2706_v30 }
  0xa5   :  { %v161_v23 = vsub.f32 %v2622_v0, %v3136_v42  ;;  %v3483_v0 = vand.u32 4294901760, %v2698_v25 }
  0xa6   :  { %395 = vmatprep.mubr.f32.mxu1 %v154_v18  ;;  %v155_v1 = vsub.f32 %v2624_v54, %v154_v18  ;;  %v3177_v17 = vpack.c.bf16 %v3481_v16, %v3480_v51  ;;  %v3496_v51 = vld [vmem:[#allocation10_spill] sm:$0xff] }
  0xa7   :  { %397 = vmatmul.mubr.f32.vlgmr.msra.gmra.mrb[0].mxu1 %v3136_v42  ;;  %v162_v3 = vand.u32 4294901760, %v161_v23  ;;  %v3186_v54 = vpack.c.bf16 %v3483_v0, %v3482_v35  ;;  %v3497_v16 = vand.u32 4294901760, %v3496_v51  ;;  %v3498_v0 = vld [vmem:[#allocation11_spill] sm:$0xff] }
  0xa8   :  { %2333 = vmatpush3.bf16.msra.mxu1 %v2690_v21  ;;  %v156_v4 = vand.u32 4294901760, %v155_v1 }
  0xa9   :  { %2335 = vmatprep.subr.bf16.mxu1 %v2700_v26  ;;  %v163_v29 = vsub.f32 %v161_v23, %v162_v3 }
  0xaa   :  { %639 = vmatprep.mubr.f32.mxu1 %v156_v4  ;;  %v157_v2 = vsub.f32 %v155_v1, %v156_v4  ;;  %v3488_v4 = vld [vmem:[#allocation3_spill] sm:$0xff] }
  0xab   :  { %v164_v58 = vand.u32 4294901760, %v163_v29  ;;  %v3489_v25 = vand.u32 4294901760, %v3488_v4  ;;  %v3236_v4 = vand.u32 4294901760, %v3138_v57 }
  0xac   :  { %2337 = vmatpush3.bf16.msra.mxu1 %v2734_v44  ;;  %v158_v37 = vand.u32 4294901760, %v157_v2  ;;  %v3490_v2 = vld [vmem:[#allocation6_spill] sm:$0xff] }
  0xad   :  { %2339 = vmatprep.subr.bf16.mxu1 %v2774_v7  ;;  %v3491_v27 = vand.u32 4294901760, %v3490_v2  ;;  %v3502_v2 = vld [vmem:[#allocation4_spill] sm:$0xff] }
  0xae   :  { %159 = vmatprep.mubr.f32.mxu0 %v158_v37 }
  0xaf   :  { %165 = vmatmul.mubr.f32.vlgmr.msra.gmra.mrb[0].mxu0 %v164_v58  ;;  %v3492_v58 = vld [vmem:[#allocation8_spill] sm:$0xff] }
  0xb0   :  { %2301 = vmatpush3.bf16.msra.mxu0 %v3020_v63  ;;  %2341 = vmatpush3.bf16.msra.mxu1 %v2791_v31  ;;  %v3493_v30 = vand.u32 4294901760, %v3492_v58  ;;  %v3503_v58 = vld [vmem:[#allocation5_spill] sm:$0xff] }
  0xb1   :  { %532 = vmatprep.mubr.f32.mxu0 %v155_v1  ;;  %2303 = vmatprep.subr.bf16.mxu0 %v3026_v10  ;;  %v3194_v1 = vpack.c.bf16 %v3485_v20, %v3484_v15  ;;  %v3499_v15 = vand.u32 4294901760, %v3498_v0  ;;  %v3500_v20 = vld [vmem:[#allocation13_spill] sm:$0xff]  ;;  %v3508_v0 = vld [vmem:[#allocation16_spill] sm:$0xff] }
  0xb2   :  { %2343 = vmatprep.subr.bf16.mxu1 %v2802_v40  ;;  %v3209_v37 = vpack.c.bf16 %v3493_v30, %v3491_v27 }
  0xb4   :  { %2305 = vmatpush3.bf16.msra.mxu0 %v3033_v36  ;;  %2345 = vmatpush3.bf16.msra.mxu1 %v2838_v9 }
  0xb5   :  { %2307 = vmatprep.subr.bf16.mxu0 %v3040_v28  ;;  %2347 = vmatprep.subr.bf16.mxu1 %v2875_v56 }
  0xb8   :  { %2309 = vmatpush3.bf16.msra.mxu0 %v3044_v43  ;;  %2349 = vmatpush3.bf16.msra.mxu1 %v2885_v46 }
  0xb9   :  { %2311 = vmatprep.subr.bf16.mxu0 %v3051_v34  ;;  %2351 = vmatprep.subr.bf16.mxu1 %v3475_v41 }
  0xbc   :  { %2313 = vmatpush3.bf16.msra.mxu0 %v3055_v60  ;;  %2353 = vmatpush3.bf16.msra.mxu1 %v3476_v62 }
  0xbd   :  { %2315 = vmatprep.subr.bf16.mxu0 %v3061_v5  ;;  %2355 = vmatprep.subr.bf16.mxu1 %v3477_v8 }
  0xc0   :  { %2317 = vmatpush3.bf16.msra.mxu0 %v3065_v50  ;;  %2357 = vmatpush3.bf16.msra.mxu1 %v3478_v39 }
  0xc1   :  { %2319 = vmatprep.subr.bf16.mxu0 %v3069_v38  ;;  %2359 = vmatprep.subr.bf16.mxu1 %v3479_v6 }
  0xc4   :  { %2321 = vmatpush3.bf16.msra.mxu0 %v3073_v48  ;;  %2361 = vmatpush3.bf16.msra.mxu1 %v3016_v59 }
  0xc5   :  { %2323 = vmatprep.subr.bf16.mxu0 %v3077_v32  ;;  %2395 = vmatprep.subr.bf16.mxu1 %v2686_v19 }
  0xc7   :  { %643 = vmatmul.mubr.f32.vlgmr.msra.gmra.mrb[2].mxu1 %v162_v3  ;;  %v3486_v3 = vld [vmem:[#allocation2_spill] sm:$0xff] }
  0xc8   :  { %2325 = vmatpush3.bf16.msra.mxu0 %v3081_v13  ;;  %2397 = vmatpush3.bf16.msra.mxu1 %v2690_v21  ;;  %v3487_v22 = vand.u32 4294901760, %v3486_v3  ;;  %v3501_v3 = vand.u32 4294901760, %v3500_v20  ;;  %v3510_v20 = vld [vmem:[#allocation19_spill] sm:$0xff] }
  0xc9   :  { %913 = vmatprep.mubr.f32.mxu1 %v154_v18  ;;  %2327 = vmatprep.subr.bf16.mxu0 %v3084_v11 }
  0xca   :  { %2399 = vmatprep.subr.bf16.mxu1 %v2700_v26  ;;  %v3201_v29 = vpack.c.bf16 %v3489_v25, %v3487_v22  ;;  %v3225_v22 = vpack.c.bf16 %v3501_v3, %v3499_v15  ;;  %v1019_v25 = vsub.f32 %v3138_v57, %v3236_v4  ;;  %v3504_v57 = vld [vmem:[#allocation7_spill] sm:$0xff]  ;;  %v3509_v15 = vld [vmem:[#allocation17_spill] sm:$0xff] }
  0xcb   :  { %v3512_v3 = vld [vmem:[#allocation23_spill] sm:$0xff] }
  0xcc   :  { %2329 = vmatpush3.bf16.msra.mxu0 %v3086_v47  ;;  %2401 = vmatpush3.bf16.msra.mxu1 %v2734_v44  ;;  %v1020_v27 = vand.u32 4294901760, %v1019_v25 }
  0xcd   :  { %2363 = vmatprep.subr.bf16.mxu0 %v3177_v17  ;;  %2403 = vmatprep.subr.bf16.mxu1 %v2774_v7 }
  0xce   :  { %v1021_v30 = vsub.f32 %v1019_v25, %v1020_v27 }
  0xcf   :  { %535 = vmatmul.mubr.f32.vlgmr.msra.gmra.mrb[2].mxu0 %v161_v23 }
  0xd0   :  { %2365 = vmatpush3.bf16.msra.mxu0 %v3186_v54  ;;  %809 = vmatprep.mubr.f32.mxu0 %v154_v18  ;;  %v3494_v18 = vld [vmem:[#allocation9_spill] sm:$0xff]  ;;  %v1022_v51 = vand.u32 4294901760, %v1021_v30 }
  0xd1   :  { %2405 = vmatpush3.bf16.msra.mxu1 %v2791_v31  ;;  %2367 = vmatprep.subr.bf16.mxu0 %v3194_v1  ;;  %v3495_v23 = vand.u32 4294901760, %v3494_v18  ;;  %v3505_v18 = vld [vmem:[#allocation12_spill] sm:$0xff] }
  0xd2   :  { %2407 = vmatprep.subr.bf16.mxu1 %v2802_v40 }
  0xd3   :  { %v3217_v35 = vpack.c.bf16 %v3497_v16, %v3495_v23  ;;  %v3506_v23 = vld [vmem:[#allocation14_spill] sm:$0xff]  ;;  %v3507_v16 = vld [vmem:[#allocation15_spill] sm:$0xff] }
  0xd4   :  { %2369 = vmatpush3.bf16.msra.mxu0 %v3201_v29 }
  0xd5   :  { %2409 = vmatpush3.bf16.msra.mxu1 %v2838_v9  ;;  %2371 = vmatprep.subr.bf16.mxu0 %v3209_v37 }
  0xd6   :  { %2411 = vmatprep.subr.bf16.mxu1 %v2875_v56 }
  0xd8   :  { %2373 = vmatpush3.bf16.msra.mxu0 %v3217_v35 }
  0xd9   :  { %2413 = vmatpush3.bf16.msra.mxu1 %v2885_v46  ;;  %2375 = vmatprep.subr.bf16.mxu0 %v3225_v22 }
  0xda   :  { %2415 = vmatprep.subr.bf16.mxu1 %v3475_v41 }
  0xdc   :  { %2377 = vmatpush3.bf16.msra.mxu0 %v3092_v12 }
  0xdd   :  { %2417 = vmatpush3.bf16.msra.mxu1 %v3476_v62  ;;  %2379 = vmatprep.subr.bf16.mxu0 %v3098_v53 }
  0xde   :  { %2419 = vmatprep.subr.bf16.mxu1 %v3477_v8 }
  0xe0   :  { %2381 = vmatpush3.bf16.msra.mxu0 %v3104_v55 }
  0xe1   :  { %2421 = vmatpush3.bf16.msra.mxu1 %v3478_v39  ;;  %2383 = vmatprep.subr.bf16.mxu0 %v3110_v61 }
  0xe2   :  { %2423 = vmatprep.subr.bf16.mxu1 %v3479_v6 }
  0xe4   :  { %2385 = vmatpush3.bf16.msra.mxu0 %v3116_v14 }
  0xe5   :  { %2425 = vmatpush3.bf16.msra.mxu1 %v3016_v59  ;;  %2387 = vmatprep.subr.bf16.mxu0 %v3122_v45 }
  0xe6   :  { %2459 = vmatprep.subr.bf16.mxu1 %v3502_v2  ;;  %v3274_v2 = vand.u32 4294901760, %v3134_v49 }
  0xe8   :  { %915 = vmatmul.mubr.f32.vlgmr.msra.gmra.mrb[4].mxu1 %v3136_v42  ;;  %2389 = vmatpush3.bf16.msra.mxu0 %v3126_v52  ;;  %v1025_v30 = vsub.f32 %v3134_v49, %v3274_v2 }
  0xe9   :  { %2461 = vmatpush3.bf16.msra.mxu1 %v3503_v58  ;;  %1259 = vmatprep.mubr.f32.mxu1 %v3236_v4  ;;  %v3513_v58 = vld [vmem:[#allocation25_spill] sm:$0xff] }
  0xea   :  { %2391 = vmatprep.subr.bf16.mxu0 %v3128_v33  ;;  %2463 = vmatprep.subr.bf16.mxu1 %v3504_v57  ;;  %v3514_v57 = vld [vmem:[#allocation28_spill] sm:$0xff] }
  0xec   :  { %2393 = vmatpush3.bf16.msra.mxu0 %v3130_v24 }
  0xed   :  { %2465 = vmatpush3.bf16.msra.mxu1 %v3505_v18  ;;  %2427 = vmatprep.subr.bf16.mxu0 %v2686_v19  ;;  %v3515_v18 = vld [vmem:[#allocation29_spill] sm:$0xff] }
  0xee   :  { %2467 = vmatprep.subr.bf16.mxu1 %v3506_v23  ;;  %v3516_v23 = vld [vmem:[#allocation30_spill] sm:$0xff] }
  0xef   :  { %811 = vmatmul.mubr.f32.vlgmr.msra.gmra.mrb[4].mxu0 %v3136_v42  ;;  %v3511_v42 = vld [vmem:[#allocation21_spill] sm:$0xff] }
  0xf0   :  { %2429 = vmatpush3.bf16.msra.mxu0 %v2690_v21  ;;  %1023 = vmatprep.mubr.f32.mxu0 %v1022_v51  ;;  %v3517_v51 = vld [vmem:[#allocation31_spill] sm:$0xff] }
  0xf1   :  { %2469 = vmatpush3.bf16.msra.mxu1 %v3507_v16  ;;  %2431 = vmatprep.subr.bf16.mxu0 %v2700_v26  ;;  %v1026_v16 = vand.u32 4294901760, %v1025_v30 }
  0xf2   :  { %2471 = vmatprep.subr.bf16.mxu1 %v3508_v0 }
  0xf3   :  { %v1027_v49 = vsub.f32 %v1025_v30, %v1026_v16 }
  0xf4   :  { %2433 = vmatpush3.bf16.msra.mxu0 %v2734_v44 }
  0xf5   :  { %2473 = vmatpush3.bf16.msra.mxu1 %v3509_v15  ;;  %2435 = vmatprep.subr.bf16.mxu0 %v2774_v7  ;;  %v1028_v0 = vand.u32 4294901760, %v1027_v49  ;;  %v3518_v15 = vld [vmem:[#allocation27_spill] sm:$0xff] }
  0xf6   :  { %2475 = vmatprep.subr.bf16.mxu1 %v3510_v20 }
  0xf8   :  { %2437 = vmatpush3.bf16.msra.mxu0 %v2791_v31 }
  0xf9   :  { %2477 = vmatpush3.bf16.msra.mxu1 %v3511_v42  ;;  %2439 = vmatprep.subr.bf16.mxu0 %v2802_v40 }
  0xfa   :  { %2479 = vmatprep.subr.bf16.mxu1 %v3512_v3 }
  0xfc   :  { %2441 = vmatpush3.bf16.msra.mxu0 %v2838_v9 }
  0xfd   :  { %2481 = vmatpush3.bf16.msra.mxu1 %v3513_v58  ;;  %2443 = vmatprep.subr.bf16.mxu0 %v2875_v56 }
  0xfe   :  { %2483 = vmatprep.subr.bf16.mxu1 %v3514_v57 }
 0x100   :  { %2445 = vmatpush3.bf16.msra.mxu0 %v2885_v46 }
 0x101   :  { %2485 = vmatpush3.bf16.msra.mxu1 %v3515_v18  ;;  %2447 = vmatprep.subr.bf16.mxu0 %v3475_v41 }
 0x102   :  { %2487 = vmatprep.subr.bf16.mxu1 %v3516_v23 }
 0x104   :  { %2449 = vmatpush3.bf16.msra.mxu0 %v3476_v62 }
 0x105   :  { %2489 = vmatpush3.bf16.msra.mxu1 %v3517_v51  ;;  %2451 = vmatprep.subr.bf16.mxu0 %v3477_v8 }
 0x106   :  { %2523 = vmatprep.subr.bf16.mxu1 %v2686_v19 }
 0x108   :  { %1261 = vmatmul.mubr.f32.vlgmr.msra.gmra.mrb[6].mxu1 %v3274_v2  ;;  %2453 = vmatpush3.bf16.msra.mxu0 %v3478_v39 }
 0x109   :  { %2525 = vmatpush3.bf16.msra.mxu1 %v2690_v21  ;;  %1503 = vmatprep.mubr.f32.mxu1 %v1020_v27 }
 0x10a   :  { %2455 = vmatprep.subr.bf16.mxu0 %v3479_v6  ;;  %2527 = vmatprep.subr.bf16.mxu1 %v2700_v26 }
 0x10c   :  { %2457 = vmatpush3.bf16.msra.mxu0 %v3016_v59 }
 0x10d   :  { %2529 = vmatpush3.bf16.msra.mxu1 %v2734_v44  ;;  %2491 = vmatprep.subr.bf16.mxu0 %v3518_v15 }
 0x10e   :  { %2531 = vmatprep.subr.bf16.mxu1 %v2774_v7 }
 0x10f   :  { %1029 = vmatmul.mubr.f32.vlgmr.msra.gmra.mrb[6].mxu0 %v1028_v0 }
 0x110   :  { %2493 = vmatpush3.bf16.msra.mxu0 %v3020_v63  ;;  %1396 = vmatprep.mubr.f32.mxu0 %v1019_v25 }
 0x111   :  { %2533 = vmatpush3.bf16.msra.mxu1 %v2791_v31  ;;  %2495 = vmatprep.subr.bf16.mxu0 %v3026_v10 }
 0x112   :  { %2535 = vmatprep.subr.bf16.mxu1 %v2802_v40 }
 0x114   :  { %2497 = vmatpush3.bf16.msra.mxu0 %v3033_v36 }
 0x115   :  { %2537 = vmatpush3.bf16.msra.mxu1 %v2838_v9  ;;  %2499 = vmatprep.subr.bf16.mxu0 %v3040_v28 }
 0x116   :  { %2539 = vmatprep.subr.bf16.mxu1 %v2875_v56 }
 0x118   :  { %2501 = vmatpush3.bf16.msra.mxu0 %v3044_v43 }
 0x119   :  { %2541 = vmatpush3.bf16.msra.mxu1 %v2885_v46  ;;  %2503 = vmatprep.subr.bf16.mxu0 %v3051_v34 }
 0x11a   :  { %2543 = vmatprep.subr.bf16.mxu1 %v3475_v41 }
 0x11c   :  { %2505 = vmatpush3.bf16.msra.mxu0 %v3055_v60 }
 0x11d   :  { %2545 = vmatpush3.bf16.msra.mxu1 %v3476_v62  ;;  %2507 = vmatprep.subr.bf16.mxu0 %v3061_v5 }
 0x11e   :  { %2547 = vmatprep.subr.bf16.mxu1 %v3477_v8 }
 0x120   :  { %2509 = vmatpush3.bf16.msra.mxu0 %v3065_v50 }
 0x121   :  { %2549 = vmatpush3.bf16.msra.mxu1 %v3478_v39  ;;  %2511 = vmatprep.subr.bf16.mxu0 %v3069_v38 }
 0x122   :  { %2551 = vmatprep.subr.bf16.mxu1 %v3479_v6 }
 0x124   :  { %2513 = vmatpush3.bf16.msra.mxu0 %v3073_v48 }
 0x125   :  { %2553 = vmatpush3.bf16.msra.mxu1 %v3016_v59  ;;  %2515 = vmatprep.subr.bf16.mxu0 %v3077_v32 }
 0x126   :  { %2587 = vmatprep.subr.bf16.mxu1 %v2686_v19  ;;  %v2629_v19 = vmov 2  }
 0x127   :  { %2620 = vset.pattern.permute.xlu0 %v2629_v19 }
 0x128   :  { %1507 = vmatmul.mubr.f32.vlgmr.msra.gmra.mrb[8].mxu1 %v1026_v16  ;;  %2517 = vmatpush3.bf16.msra.mxu0 %v3081_v13 }
 0x129   :  { %2589 = vmatpush3.bf16.msra.mxu1 %v2690_v21  ;;  %1777 = vmatprep.mubr.f32.mxu1 %v3236_v4 }
 0x12a   :  { %2519 = vmatprep.subr.bf16.mxu0 %v3084_v11  ;;  %2591 = vmatprep.subr.bf16.mxu1 %v2700_v26 }
 0x12c   :  { %2521 = vmatpush3.bf16.msra.mxu0 %v3086_v47 }
 0x12d   :  { %2593 = vmatpush3.bf16.msra.mxu1 %v2734_v44  ;;  %2555 = vmatprep.subr.bf16.mxu0 %v3177_v17 }
 0x12e   :  { %2595 = vmatprep.subr.bf16.mxu1 %v2774_v7 }
 0x12f   :  { %1399 = vmatmul.mubr.f32.vlgmr.msra.gmra.mrb[8].mxu0 %v1025_v30 }
 0x130   :  { %2557 = vmatpush3.bf16.msra.mxu0 %v3186_v54  ;;  %1673 = vmatprep.mubr.f32.mxu0 %v3236_v4 }
 0x131   :  { %2597 = vmatpush3.bf16.msra.mxu1 %v2791_v31  ;;  %2559 = vmatprep.subr.bf16.mxu0 %v3194_v1 }
 0x132   :  { %2599 = vmatprep.subr.bf16.mxu1 %v2802_v40 }
 0x134   :  { %2561 = vmatpush3.bf16.msra.mxu0 %v3201_v29 }
 0x135   :  { %2601 = vmatpush3.bf16.msra.mxu1 %v2838_v9  ;;  %2563 = vmatprep.subr.bf16.mxu0 %v3209_v37 }
 0x136   :  { %2603 = vmatprep.subr.bf16.mxu1 %v2875_v56 }
 0x138   :  { %2565 = vmatpush3.bf16.msra.mxu0 %v3217_v35 }
 0x139   :  { %2605 = vmatpush3.bf16.msra.mxu1 %v2885_v46  ;;  %2567 = vmatprep.subr.bf16.mxu0 %v3225_v22 }
 0x13a   :  { %2607 = vmatprep.subr.bf16.mxu1 %v3475_v41 }
 0x13c   :  { %2569 = vmatpush3.bf16.msra.mxu0 %v3092_v12 }
 0x13d   :  { %2609 = vmatpush3.bf16.msra.mxu1 %v3476_v62  ;;  %2571 = vmatprep.subr.bf16.mxu0 %v3098_v53 }
 0x13e   :  { %2611 = vmatprep.subr.bf16.mxu1 %v3477_v8 }
 0x140   :  { %2573 = vmatpush3.bf16.msra.mxu0 %v3104_v55 }
 0x141   :  { %2613 = vmatpush3.bf16.msra.mxu1 %v3478_v39  ;;  %2575 = vmatprep.subr.bf16.mxu0 %v3110_v61 }
 0x142   :  { %2615 = vmatprep.subr.bf16.mxu1 %v3479_v6 }
 0x144   :  { %2577 = vmatpush3.bf16.msra.mxu0 %v3116_v14 }
 0x145   :  { %2617 = vmatpush3.bf16.msra.mxu1 %v3016_v59  ;;  %2579 = vmatprep.subr.bf16.mxu0 %v3122_v45 }
 0x148   :  { %1779 = vmatmul.mubr.f32.vlgmr.msra.gmra.mrb[10].mxu1 %v3274_v2  ;;  %2581 = vmatpush3.bf16.msra.mxu0 %v3126_v52 }
 0x149   :  { %2583 = vmatprep.subr.bf16.mxu0 %v3128_v33 }
 0x14c   :  { %2585 = vmatpush3.bf16.msra.mxu0 %v3130_v24 }
 0x14f   :  { %1675 = vmatmul.mubr.f32.vlgmr.msra.gmra.mrb[10].mxu0 %v3274_v2 }
 0x17a   :  { %v1881_v21 = vpop.f32.mrb[0].mxu1 }
 0x17b   :  { %v1882_v26 = vpop.f32.mrb[1].mxu1 }
 0x17c   :  { %v1883_v44 = vadd.f32 %v1882_v26, %v1881_v21 }
 0x182   :  { %v1846_v53 = vpop.f32.mrb[0].mxu0 }
 0x183   :  { %v1847_v7 = vpop.f32.mrb[1].mxu0 }
 0x184   :  { %v1848_v12 = vadd.f32 %v1847_v7, %v1846_v53 }
 0x186   :  { %v399_v31 = vadd.f32 %v1883_v44, %v1848_v12 }
 0x19a   :  { %v1951_v40 = vpop.f32.mrb[2].mxu1 }
 0x19b   :  { %v1952_v47 = vpop.f32.mrb[3].mxu1 }
 0x19c   :  { %v1953_v9 = vadd.f32 %v1952_v47, %v1951_v40 }
 0x1a2   :  { %v1916_v56 = vpop.f32.mrb[2].mxu0 }
 0x1a3   :  { %v1917_v46 = vpop.f32.mrb[3].mxu0 }
 0x1a4   :  { %v1918_v59 = vadd.f32 %v1917_v46, %v1916_v56 }
 0x1a6   :  { %v537_v13 = vadd.f32 %v1918_v59, %v399_v31 }
 0x1a8   :  { %v645_v28 = vadd.f32 %v1953_v9, %v537_v13 }
 0x1bb   :  { %v2021_v63 = vpop.f32.mrb[4].mxu1 }
 0x1bc   :  { %v2022_v10 = vpop.f32.mrb[5].mxu1 }
 0x1bd   :  { %v2023_v34 = vadd.f32 %v2022_v10, %v2021_v63 }
 0x1c2   :  { %v1986_v36 = vpop.f32.mrb[4].mxu0 }
 0x1c3   :  { %v1987_v11 = vpop.f32.mrb[5].mxu0 }
 0x1c4   :  { %v1988_v43 = vadd.f32 %v1987_v11, %v1986_v36 }
 0x1c6   :  { %v813_v60 = vadd.f32 %v1988_v43, %v645_v28 }
 0x1c8   :  { %v917_v5 = vadd.f32 %v2023_v34, %v813_v60 }
 0x1ca   :  { %2625 = vrcp.f32 %v917_v5 }
 0x1cb   :  { %2627 = vlog2.f32 %v917_v5 }
 0x1d4   :  { %v2626_v50 = vpop.eup %2625 }
 0x1d5   :  { %v1785_v38 = vmul.f32 %v2626_v50, %v917_v5  ;;  %v2628_v20 = vpop.eup %2627 }
 0x1d6   :  { %v1795_v3 = vmul.f32 0.6931472, %v2628_v20 }
 0x1d7   :  { %v1786_v48 = vsub.f32 2.0, %v1785_v38 }
 0x1d9   :  { %v1787_v32 = vmul.f32 %v2626_v50, %v1786_v48 }
 0x1db   :  { %v2091_v55 = vpop.f32.mrb[6].mxu1  ;;  %1790 = vperm.xlu0 %2620, %v1787_v32  }
 0x1dc   :  { %v2092_v61 = vpop.f32.mrb[7].mxu1 }
 0x1dd   :  { %v2093_v14 = vadd.f32 %v2092_v61, %v2091_v55 }
 0x1e2   :  { %v2056_v45 = vpop.f32.mrb[6].mxu0 }
 0x1e3   :  { %v2057_v52 = vpop.f32.mrb[7].mxu0 }
 0x1e4   :  { %v2058_v33 = vadd.f32 %v2057_v52, %v2056_v45 }
 0x1e6   :  { %v1263_v24 = vadd.f32 %v2093_v14, %v2058_v33 }
 0x1fb   :  { %v2161_v41 = vpop.f32.mrb[8].mxu1 }
 0x1fc   :  { %v2162_v62 = vpop.f32.mrb[9].mxu1 }
 0x1fd   :  { %v2163_v8 = vadd.f32 %v2162_v62, %v2161_v41 }
 0x202   :  { %v2126_v39 = vpop.f32.mrb[8].mxu0 }
 0x203   :  { %v2127_v6 = vpop.f32.mrb[9].mxu0 }
 0x204   :  { %v2128_v17 = vadd.f32 %v2127_v6, %v2126_v39 }
 0x206   :  { %v1401_v54 = vadd.f32 %v2128_v17, %v1263_v24 }
 0x208   :  { %v1509_v1 = vadd.f32 %v2163_v8, %v1401_v54 }
 0x21b   :  { %v2231_v29 = vpop.f32.mrb[10].mxu1 }
 0x21c   :  { %v2232_v37 = vpop.f32.mrb[11].mxu1 }
 0x21d   :  { %v2233_v35 = vadd.f32 %v2232_v37, %v2231_v29 }
 0x222   :  { %v2196_v22 = vpop.f32.mrb[10].mxu0 }
 0x223   :  { %v2197_v4 = vpop.f32.mrb[11].mxu0 }
 0x224   :  { %v2198_v25 = vadd.f32 %v2197_v4, %v2196_v22 }
 0x226   :  { %v1677_v27 = vadd.f32 %v2198_v25, %v1509_v1 }
 0x228   :  { %v1781_v42 = vadd.f32 %v2233_v35, %v1677_v27 }
 0x22a   :  { %v1796_v2 = vmul.f32 %v1787_v32, %v1781_v42 }
 0x22c   :  { %v1797_v58 = vsub.f32 %v1795_v3, %v1796_v2 }
 0x22e   :  { %1801 = vrot.lane.b32.xlu1 %v1797_v58, %s2630_s1 }
 0x25a   :  { %v1791_v57 = vpop.permute.xlu0 %1790 }
 0x25b   :  { %v1793_v30 = vmul.f32 %v1791_v57, %v917_v5 }
 0x25d   :  { %1799 = vst.msk [vmem:[%s3368_s2] sm:$0xff] %vm1798_vm0, %v1793_v30 }
 0x2a0   :  { %v1802_v18 = vpop.permute.xlu1 %1801 }
 0x2a1   :  { %1805 = vst.msk [vmem:[%s3369_s3] sm:$0xff] %vm1804_vm1, %v1802_v18 }

</bundles_post_ra>
